<compile_context>
chip_gen: v6e
topology: v6e:2x2x1
jax: 0.10.0
libtpu: 0.0.40
codegen_flags: <defaults>
</compile_context>

<pallas_src>
import jax
import jax.numpy as jnp
from jax.experimental import pallas as pl
from jax.experimental.pallas import tpu as pltpu


def _round_up(n, m):
    return ((n + m - 1) // m) * m


def vae_kernel(x_ref, eps_ref, we_ref, wmv_ref, wd1_ref, wd2_ref, b_ref, out_ref):
    d_in, hidden = we_ref.shape
    latent = eps_ref.shape[1]
    two_l = 2 * latent

    # Static slices of the packed bias blob [1, H + 2L + H + D_in] (fp32).
    be = b_ref[:, :hidden]
    bmv = b_ref[:, hidden:hidden + two_l]
    bd1 = b_ref[:, hidden + two_l:2 * hidden + two_l]
    bd2 = b_ref[:, 2 * hidden + two_l:]

    cd = we_ref.dtype  # matmul operand dtype (f32 or bf16); accumulation is always f32.

    # ---- Encoder hidden: Linear + ReLU (MXU + VPU) ----
    x = x_ref[...]
    h = jnp.dot(x.astype(cd), we_ref[...], preferred_element_type=jnp.float32) + be
    h = jnp.maximum(h, 0.0)

    # ---- Fused mu / log_var heads: one [H, 2L] matmul ----
    mv = jnp.dot(h.astype(cd), wmv_ref[...], preferred_element_type=jnp.float32) + bmv
    mu = mv[:, :latent]
    log_var = mv[:, latent:]

    # ---- Sampler: z = eps * exp(0.5 * log_var) + mu (kept fp32 for exp range) ----
    # TODO(synk): noise comes in as an explicit eps input (mirrors torch.randn_like);
    #             pltpu.stateful_normal could generate it in-kernel but changes the stream.
    z = eps_ref[...] * jnp.exp(0.5 * log_var) + mu

    # ---- Decoder: Linear + ReLU, then final Linear (no ReLU) ----
    hd = jnp.dot(z.astype(cd), wd1_ref[...], preferred_element_type=jnp.float32) + bd1
    hd = jnp.maximum(hd, 0.0)
    d = jnp.dot(hd.astype(cd), wd2_ref[...], preferred_element_type=jnp.float32) + bd2

    # ---- Single lane-dense output slab: [ mu | log_var | d | zero-pad to 128 lanes ] ----
    pieces = [mv, d]
    pad = out_ref.shape[1] - (two_l + d_in)
    if pad:
        pieces.append(jnp.zeros((mv.shape[0], pad), jnp.float32))
    out_ref[...] = jnp.concatenate(pieces, axis=-1)


def vae_forward(x, params, eps, *, tb=256, matmul_dtype=jnp.float32):
    """VAE forward in one Pallas kernel, tiled over the batch dimension.

    Returns (mu, log_var, d) with the same semantics as the PyTorch Net.
    Use matmul_dtype=jnp.bfloat16 on v6e/v7x to feed the MXU bf16 (f32 accumulation).
    """
    B, d_in = x.shape
    hidden = params["we"].shape[1]
    latent = params["wm"].shape[1]
    two_l = 2 * latent

    # Fuse the mu / log_var heads and pack the biases into one fp32 blob.
    wmv = jnp.concatenate([params["wm"], params["wv"]], axis=1)
    bias_blob = jnp.concatenate(
        [params["be"], params["bm"], params["bv"], params["bd1"], params["bd2"]], axis=1)

    cast = lambda w: w.astype(matmul_dtype)
    we, wd1, wd2, wmv = cast(params["we"]), cast(params["wd1"]), cast(params["wd2"]), cast(wmv)

    # Batch tiling: TB rows per grid step (use >=128 for MXU fill at large batch; 8-aligned).
    tb_eff = min(tb, _round_up(B, 8))
    b_pad = _round_up(B, tb_eff)
    if b_pad != B:
        x = jnp.pad(x, ((0, b_pad - B), (0, 0)))
        eps = jnp.pad(eps, ((0, b_pad - B), (0, 0)))
    grid = (pl.cdiv(b_pad, tb_eff),)

    out_raw = two_l + d_in
    out_pad = _round_up(out_raw, 128)  # lane-dense (unmasked-store) output width

    stream = lambda w: pl.BlockSpec((tb_eff, w), lambda i: (i, 0))     # batch-tiled
    resident = lambda shape: pl.BlockSpec(shape, lambda i: (0, 0))     # fetched once

    weight_bytes = sum(int(a.size) * a.dtype.itemsize
                       for a in (we, wmv, wd1, wd2, bias_blob))
    cost = pl.CostEstimate(
        flops=2 * b_pad * (d_in * hidden + hidden * two_l + latent * hidden + hidden * d_in),
        transcendentals=b_pad * latent,
        bytes_accessed=int(x.size) * 4 + int(eps.size) * 4 + weight_bytes + b_pad * out_pad * 4,
    )

    out = pl.pallas_call(
        vae_kernel,
        out_shape=jax.ShapeDtypeStruct((b_pad, out_pad), jnp.float32),
        grid=grid,
        in_specs=[
            stream(d_in),                # x
            stream(latent),              # eps
            resident(we.shape),          # encoder weight
            resident(wmv.shape),         # fused mu|log_var head weight
            resident(wd1.shape),         # decoder hidden weight
            resident(wd2.shape),         # decoder output weight
            resident(bias_blob.shape),   # packed biases
        ],
        out_specs=stream(out_pad),
        compiler_params=pltpu.CompilerParams(dimension_semantics=("parallel",)),
        cost_estimate=cost,
    )(x, eps, we, wmv, wd1, wd2, bias_blob)

    mu = out[:B, :latent]
    log_var = out[:B, latent:two_l]
    d = out[:B, two_l:out_raw]
    return mu, log_var, d


def init_params(key, layer_sizes, latent_size):
    """Deterministic synthetic parameters. Weights stored as [in, out] (= PyTorch W.T)."""
    d_in, hidden = layer_sizes

    def linear(k, fan_in, fan_out):
        kw, kb = jax.random.split(k)
        w = jax.random.normal(kw, (fan_in, fan_out), jnp.float32) / jnp.sqrt(float(fan_in))
        b = 0.01 * jax.random.normal(kb, (1, fan_out), jnp.float32)
        return w, b

    ks = jax.random.split(key, 5)
    we, be = linear(ks[0], d_in, hidden)           # encoder hidden
    wm, bm = linear(ks[1], hidden, latent_size)    # mean head
    wv, bv = linear(ks[2], hidden, latent_size)    # log_var head
    wd1, bd1 = linear(ks[3], latent_size, hidden)  # decoder hidden
    wd2, bd2 = linear(ks[4], hidden, d_in)         # decoder output
    return dict(we=we, be=be, wm=wm, bm=bm, wv=wv, bv=bv,
                wd1=wd1, bd1=bd1, wd2=wd2, bd2=bd2)


def reference_forward(x, params, eps):
    """Pure-JAX reference with identical semantics, for correctness checking."""
    h = jnp.maximum(x @ params["we"] + params["be"], 0.0)
    mu = h @ params["wm"] + params["bm"]
    log_var = h @ params["wv"] + params["bv"]
    z = eps * jnp.exp(0.5 * log_var) + mu
    hd = jnp.maximum(z @ params["wd1"] + params["bd1"], 0.0)
    d = hd @ params["wd2"] + params["bd2"]
    return mu, log_var, d


if __name__ == "__main__":
    layer_sizes = [64, 32]
    latent_size = 16
    batch = 8

    key = jax.random.PRNGKey(0)
    k_params, k_x, k_eps = jax.random.split(key, 3)

    params = init_params(k_params, layer_sizes, latent_size)
    x = jax.random.normal(k_x, (batch, layer_sizes[0]), jnp.float32)
    eps = jax.random.normal(k_eps, (batch, latent_size), jnp.float32)

    # fp32 path, small batch (single grid step).
    mu, log_var, d = vae_forward(x, params, eps)
    jax.block_until_ready((mu, log_var, d))
    mu_r, lv_r, d_r = reference_forward(x, params, eps)
    assert jnp.allclose(mu, mu_r, atol=1e-5, rtol=1e-5)
    assert jnp.allclose(log_var, lv_r, atol=1e-5, rtol=1e-5)
    assert jnp.allclose(d, d_r, atol=1e-4, rtol=1e-4)

    # fp32 path, larger ragged batch: exercises the batch grid + padding (grid = 3 steps).
    k_x2, k_eps2 = jax.random.split(jax.random.PRNGKey(1))
    x2 = jax.random.normal(k_x2, (300, layer_sizes[0]), jnp.float32)
    eps2 = jax.random.normal(k_eps2, (300, latent_size), jnp.float32)
    mu2, lv2, d2 = vae_forward(x2, params, eps2, tb=128)
    jax.block_until_ready((mu2, lv2, d2))
    mu2_r, lv2_r, d2_r = reference_forward(x2, params, eps2)
    assert jnp.allclose(mu2, mu2_r, atol=1e-5, rtol=1e-5)
    assert jnp.allclose(lv2, lv2_r, atol=1e-5, rtol=1e-5)
    assert jnp.allclose(d2, d2_r, atol=1e-4, rtol=1e-4)

    # bf16-matmul path (v6e/v7x MXU feed); f32 accumulation, loose tolerance vs f32 reference.
    mu_b, lv_b, d_b = vae_forward(x, params, eps, matmul_dtype=jnp.bfloat16)
    jax.block_until_ready((mu_b, lv_b, d_b))
    assert jnp.allclose(mu_b, mu_r, atol=2e-1, rtol=2e-1)
    assert jnp.allclose(lv_b, lv_r, atol=2e-1, rtol=2e-1)
    assert jnp.allclose(d_b, d_r, atol=2e-1, rtol=2e-1)

    print("KERNEL_OK")
</pallas_src>

<mosaic_0001>
module attributes {stable_mosaic.version = 11 : i64} {
  func.func @vae_kernel(%arg0: i32, %arg1: memref<8x64xf32, #tpu.memory_space<vmem>>, %arg2: memref<8x16xf32, #tpu.memory_space<vmem>>, %arg3: memref<64x32xf32, #tpu.memory_space<vmem>>, %arg4: memref<32x32xf32, #tpu.memory_space<vmem>>, %arg5: memref<16x32xf32, #tpu.memory_space<vmem>>, %arg6: memref<32x64xf32, #tpu.memory_space<vmem>>, %arg7: memref<1x160xf32, #tpu.memory_space<vmem>>, %arg8: memref<8x128xf32, #tpu.memory_space<vmem>>) attributes {dimension_semantics = [#tpu.dimension_semantics<parallel>], iteration_bounds = array<i64: 1>, scalar_prefetch = 0 : i64, scratch_operands = 0 : i64, tpu.core_type = #tpu.core_type<tc>, window_params = [{transform_indices = @transform_0, window_bounds = array<i64: 8, 64>}, {transform_indices = @transform_1, window_bounds = array<i64: 8, 16>}, {pipeline_mode = #tpu.pipeline_mode<synchronous>, transform_indices = @transform_2, window_bounds = array<i64: 64, 32>}, {pipeline_mode = #tpu.pipeline_mode<synchronous>, transform_indices = @transform_3, window_bounds = array<i64: 32, 32>}, {pipeline_mode = #tpu.pipeline_mode<synchronous>, transform_indices = @transform_4, window_bounds = array<i64: 16, 32>}, {pipeline_mode = #tpu.pipeline_mode<synchronous>, transform_indices = @transform_5, window_bounds = array<i64: 32, 64>}, {pipeline_mode = #tpu.pipeline_mode<synchronous>, transform_indices = @transform_6, window_bounds = array<i64: 1, 160>}, {transform_indices = @transform_7, window_bounds = array<i64: 8, 128>}]} {
    %c0 = arith.constant 0 : index
    %c0_0 = arith.constant 0 : index
    %0 = vector.load %arg7[%c0, %c0_0] : memref<1x160xf32, #tpu.memory_space<vmem>>, vector<1x32xf32>
    %c0_1 = arith.constant 0 : index
    %c32 = arith.constant 32 : index
    %1 = vector.load %arg7[%c0_1, %c32] : memref<1x160xf32, #tpu.memory_space<vmem>>, vector<1x32xf32>
    %c0_2 = arith.constant 0 : index
    %c64 = arith.constant 64 : index
    %2 = vector.load %arg7[%c0_2, %c64] : memref<1x160xf32, #tpu.memory_space<vmem>>, vector<1x32xf32>
    %c0_3 = arith.constant 0 : index
    %c96 = arith.constant 96 : index
    %3 = vector.load %arg7[%c0_3, %c96] : memref<1x160xf32, #tpu.memory_space<vmem>>, vector<1x64xf32>
    %c0_4 = arith.constant 0 : index
    %c0_5 = arith.constant 0 : index
    %4 = vector.load %arg1[%c0_4, %c0_5] : memref<8x64xf32, #tpu.memory_space<vmem>>, vector<8x64xf32>
    %c0_6 = arith.constant 0 : index
    %c0_7 = arith.constant 0 : index
    %5 = vector.load %arg3[%c0_6, %c0_7] : memref<64x32xf32, #tpu.memory_space<vmem>>, vector<64x32xf32>
    %cst = arith.constant dense<0.000000e+00> : vector<8x32xf32>
    %6 = tpu.matmul %4, %5, %cst {dimension_numbers = #tpu.dot_dimension_numbers<[1], [0], [0], [1], [0, 0, 1, 1], [], []>} : vector<8x64xf32>, vector<64x32xf32>, vector<8x32xf32> -> vector<8x32xf32>
    %7 = vector.broadcast %0 : vector<1x32xf32> to vector<8x32xf32>
    %8 = arith.addf %6, %7 : vector<8x32xf32>
    %cst_8 = arith.constant 0.000000e+00 : f32
    %9 = vector.broadcast %cst_8 : f32 to vector<8x32xf32>
    %10 = arith.maximumf %8, %9 : vector<8x32xf32>
    %c0_9 = arith.constant 0 : index
    %c0_10 = arith.constant 0 : index
    %11 = vector.load %arg4[%c0_9, %c0_10] : memref<32x32xf32, #tpu.memory_space<vmem>>, vector<32x32xf32>
    %cst_11 = arith.constant dense<0.000000e+00> : vector<8x32xf32>
    %12 = tpu.matmul %10, %11, %cst_11 {dimension_numbers = #tpu.dot_dimension_numbers<[1], [0], [0], [1], [0, 0, 1, 1], [], []>} : vector<8x32xf32>, vector<32x32xf32>, vector<8x32xf32> -> vector<8x32xf32>
    %13 = vector.broadcast %1 : vector<1x32xf32> to vector<8x32xf32>
    %14 = arith.addf %12, %13 : vector<8x32xf32>
    %15 = vector.extract_strided_slice %14 {offsets = [0, 0], sizes = [8, 16], strides = [1, 1]} : vector<8x32xf32> to vector<8x16xf32>
    %16 = vector.extract_strided_slice %14 {offsets = [0, 16], sizes = [8, 16], strides = [1, 1]} : vector<8x32xf32> to vector<8x16xf32>
    %c0_12 = arith.constant 0 : index
    %c0_13 = arith.constant 0 : index
    %17 = vector.load %arg2[%c0_12, %c0_13] : memref<8x16xf32, #tpu.memory_space<vmem>>, vector<8x16xf32>
    %cst_14 = arith.constant 5.000000e-01 : f32
    %18 = vector.broadcast %cst_14 : f32 to vector<8x16xf32>
    %19 = arith.mulf %18, %16 : vector<8x16xf32>
    %20 = math.exp %19 : vector<8x16xf32>
    %21 = arith.mulf %17, %20 : vector<8x16xf32>
    %22 = arith.addf %21, %15 : vector<8x16xf32>
    %c0_15 = arith.constant 0 : index
    %c0_16 = arith.constant 0 : index
    %23 = vector.load %arg5[%c0_15, %c0_16] : memref<16x32xf32, #tpu.memory_space<vmem>>, vector<16x32xf32>
    %cst_17 = arith.constant dense<0.000000e+00> : vector<8x32xf32>
    %24 = tpu.matmul %22, %23, %cst_17 {dimension_numbers = #tpu.dot_dimension_numbers<[1], [0], [0], [1], [0, 0, 1, 1], [], []>} : vector<8x16xf32>, vector<16x32xf32>, vector<8x32xf32> -> vector<8x32xf32>
    %25 = vector.broadcast %2 : vector<1x32xf32> to vector<8x32xf32>
    %26 = arith.addf %24, %25 : vector<8x32xf32>
    %cst_18 = arith.constant 0.000000e+00 : f32
    %27 = vector.broadcast %cst_18 : f32 to vector<8x32xf32>
    %28 = arith.maximumf %26, %27 : vector<8x32xf32>
    %c0_19 = arith.constant 0 : index
    %c0_20 = arith.constant 0 : index
    %29 = vector.load %arg6[%c0_19, %c0_20] : memref<32x64xf32, #tpu.memory_space<vmem>>, vector<32x64xf32>
    %cst_21 = arith.constant dense<0.000000e+00> : vector<8x64xf32>
    %30 = tpu.matmul %28, %29, %cst_21 {dimension_numbers = #tpu.dot_dimension_numbers<[1], [0], [0], [1], [0, 0, 1, 1], [], []>} : vector<8x32xf32>, vector<32x64xf32>, vector<8x64xf32> -> vector<8x64xf32>
    %31 = vector.broadcast %3 : vector<1x64xf32> to vector<8x64xf32>
    %32 = arith.addf %30, %31 : vector<8x64xf32>
    %cst_22 = arith.constant 0.000000e+00 : f32
    %33 = vector.broadcast %cst_22 : f32 to vector<8x32xf32>
    %34 = tpu.concatenate %14, %32, %33 in 1 : vector<8x32xf32>, vector<8x64xf32>, vector<8x32xf32> -> vector<8x128xf32>
    %c0_23 = arith.constant 0 : index
    %c0_24 = arith.constant 0 : index
    %35 = vector.load %arg8[%c0_23, %c0_24] : memref<8x128xf32, #tpu.memory_space<vmem>>, vector<8x128xf32>
    tpu.vector_store %arg8[%c0_23, %c0_24], %34 {strides = array<i32>} : memref<8x128xf32, #tpu.memory_space<vmem>>, vector<8x128xf32>,
    return
  }
  func.func @transform_0(%arg0: i32) -> (i32, i32) {
    %c0_i32 = arith.constant 0 : i32
    %c0_i32_0 = arith.constant 0 : i32
    return %arg0, %c0_i32 : i32, i32
  }
  func.func @transform_1(%arg0: i32) -> (i32, i32) {
    %c0_i32 = arith.constant 0 : i32
    %c0_i32_0 = arith.constant 0 : i32
    return %arg0, %c0_i32 : i32, i32
  }
  func.func @transform_2(%arg0: i32) -> (i32, i32) {
    %c0_i32 = arith.constant 0 : i32
    %c0_i32_0 = arith.constant 0 : i32
    %c0_i32_1 = arith.constant 0 : i32
    return %c0_i32, %c0_i32_0 : i32, i32
  }
  func.func @transform_3(%arg0: i32) -> (i32, i32) {
    %c0_i32 = arith.constant 0 : i32
    %c0_i32_0 = arith.constant 0 : i32
    %c0_i32_1 = arith.constant 0 : i32
    return %c0_i32, %c0_i32_0 : i32, i32
  }
  func.func @transform_4(%arg0: i32) -> (i32, i32) {
    %c0_i32 = arith.constant 0 : i32
    %c0_i32_0 = arith.constant 0 : i32
    %c0_i32_1 = arith.constant 0 : i32
    return %c0_i32, %c0_i32_0 : i32, i32
  }
  func.func @transform_5(%arg0: i32) -> (i32, i32) {
    %c0_i32 = arith.constant 0 : i32
    %c0_i32_0 = arith.constant 0 : i32
    %c0_i32_1 = arith.constant 0 : i32
    return %c0_i32, %c0_i32_0 : i32, i32
  }
  func.func @transform_6(%arg0: i32) -> (i32, i32) {
    %c0_i32 = arith.constant 0 : i32
    %c0_i32_0 = arith.constant 0 : i32
    %c0_i32_1 = arith.constant 0 : i32
    return %c0_i32, %c0_i32_0 : i32, i32
  }
  func.func @transform_7(%arg0: i32) -> (i32, i32) {
    %c0_i32 = arith.constant 0 : i32
    %c0_i32_0 = arith.constant 0 : i32
    return %arg0, %c0_i32 : i32, i32
  }
}

</mosaic_0001>

<bundles_post_ra>
// kernel: tpu_custom_call.1
= control target key start
LH: loop header
LB: loop body
LE: loop exit
PB: predicated region body
PF: predicated region fallthrough
CT: control target
= control target key end

     0   :  { %v510_v1 = vmov 0.0   ;;  %vm511_vm0 = vmmov 0   ;;  %s656_s0 = inlined_call_operand.vmem [shape: f32[8,64], index: 0, kind: input, shape index: {}]   ;;  %s657_s1 = inlined_call_operand.vmem [shape: f32[8,16], index: 1, kind: input, shape index: {}]   ;;  %s658_s2 = inlined_call_operand.vmem [shape: f32[64,32], index: 2, kind: input, shape index: {}]   ;;  %s659_s3 = inlined_call_operand.vmem [shape: f32[32,32], index: 3, kind: input, shape index: {}]   ;;  %s660_s4 = inlined_call_operand.vmem [shape: f32[16,32], index: 4, kind: input, shape index: {}]   ;;  %s661_s5 = inlined_call_operand.vmem [shape: f32[32,64], index: 5, kind: input, shape index: {}]   ;;  %s662_s6 = inlined_call_operand.vmem [shape: f32[1,160], index: 6, kind: input, shape index: {}]   ;;  %s663_s7 = inlined_call_operand.hbm [shape: f32[8,128], index: 7, kind: output, shape index: {}]  }
   0x1   :  { %v37_v0 = vld [vmem:[%s658_s2 + $0x38] sm:$0xff]  ;;  %431 = vmatprep.subr.mxu0 %v510_v1  ;;  %v36_v2 = vld [vmem:[%s658_s2 + $0x30] sm:$0xff]  ;;  %447 = vmatprep.mubr.msk.f32.mxu0 %vm511_vm0, %v510_v1  ;;  %v35_v3 = vld [vmem:[%s658_s2 + $0x28] sm:$0xff] }
   0x2   :  { %432 = vmatpush3.msra.mxu0 %v37_v0  ;;  %450 = vmatprep.subr.mxu1 %v510_v1  ;;  %v122_v4 = vld [vmem:[%s659_s3 + $0x18] sm:$0xff] }
   0x3   :  { %433 = vmatprep.subr.mxu0 %v510_v1  ;;  %458 = vmatprep.mubr.msk.f32.mxu1 %vm511_vm0, %v510_v1 }
   0x4   :  { %12 = vsyncpa [#allocation3], 0  ;;  %434 = vmatpush3.msra.mxu0 %v36_v2  ;;  %451 = vmatpush3.msra.mxu1 %v122_v4  ;;  %v34_v5 = vld [vmem:[%s658_s2 + $0x20] sm:$0xff]  ;;  %v33_v6 = vld [vmem:[%s658_s2 + $0x18] sm:$0xff]  ;;  %vm44_vm1 = vcmask 523264   ;;  %s512_s27 = smov 96   ;;  %v295_v36 = vlaneseq }
   0x5   :  { %435 = vmatprep.subr.mxu0 %v510_v1  ;;  %452 = vmatprep.subr.mxu1 %v510_v1  ;;  %v32_v7 = vld [vmem:[%s658_s2 + $0x10] sm:$0xff]  ;;  %v31_v8 = vld [vmem:[%s658_s2 + $0x8] sm:$0xff]  ;;  %v30_v9 = vld [vmem:[%s658_s2] sm:$0xff]  ;;  %vm126_vm2 = vcmask 261120   ;;  %s513_s8 = smov 64   ;;  %s514_s9 = smov 112  }
   0x6   :  { %436 = vmatpush3.msra.mxu0 %v35_v3  ;;  %v29_v10 = vld [vmem:[%s656_s0] sm:$0xff]  ;;  %v121_v11 = vld [vmem:[%s659_s3 + $0x10] sm:$0xff]  ;;  %v120_v12 = vld [vmem:[%s659_s3 + $0x8] sm:$0xff]  ;;  %vm215_vm3 = vcmask 130048   ;;  %v296_v37 = vshrl.u32 %v295_v36, 7  ;;  %s515_s20 = smov 32  }
   0x7   :  { %437 = vmatprep.subr.mxu0 %v510_v1  ;;  %453 = vmatpush3.msra.mxu1 %v121_v11  ;;  %v119_v13 = vld [vmem:[%s659_s3] sm:$0xff]  ;;  %v211_v25 = vld [vmem:[%s660_s4 + $0x8] sm:$0xff]  ;;  %v293_v32 = vld [vmem:[%s661_s5 + $0x18] sm:$0xff]  ;;  %vm387_vm4 = vcmask 785408  }
   0x8   :  { %438 = vmatpush3.msra.mxu0 %v34_v5  ;;  %454 = vmatprep.subr.mxu1 %v510_v1  ;;  %v404_v14 = vld [vmem:[%s662_s6] ss:$0 sm:$0xff]  ;;  %v292_v33 = vld [vmem:[%s661_s5 + $0x10] sm:$0xff]  ;;  %v291_v34 = vld [vmem:[%s661_s5 + $0x8] sm:$0xff]  ;;  %v297_v39 = vsub.s32 0, %v296_v37  ;;  %v301_v40 = vsub.s32 1, %v296_v37 }
   0x9   :  { %439 = vmatprep.subr.mxu0 %v510_v1  ;;  %455 = vmatpush3.msra.mxu1 %v120_v12  ;;  %v210_v26 = vld [vmem:[%s660_s4] sm:$0xff] }
   0xa   :  { %440 = vmatpush3.msra.mxu0 %v33_v6  ;;  %456 = vmatprep.subr.mxu1 %v510_v1  ;;  %v200_v28 = vld [vmem:[%s657_s1] sm:$0xff] }
   0xb   :  { %441 = vmatprep.subr.mxu0 %v510_v1  ;;  %457 = vmatpush3.msra.mxu1 %v119_v13  ;;  %v290_v35 = vld [vmem:[%s661_s5] sm:$0xff]  ;;  %s516_s5 = smov [#allocation2]  }
   0xc   :  { %442 = vmatpush3.msra.mxu0 %v32_v7  ;;  %461 = vmatprep.subr.mxu1 %v510_v1  ;;  %v28_v38 = vld [vmem:[%s662_s6] sm:$0x3]  ;;  %s396_s6 = sshll.u32 %s516_s5, 4  ;;  %s397_s6 = int_to_ptr.vmem [resolvable:$true] %s396_s6 }
   0xd   :  { %443 = vmatprep.subr.mxu0 %v510_v1  ;;  %123 = vrot.lane.b32.xlu0 %v404_v14, %s512_s27  ;;  %v298_v41 = vrot.slane %v28_v38, %v297_v39  ;;  %v302_v42 = vrot.slane %v28_v38, %v301_v40  ;;  %s488_s21 = scalar_lea.vmem %s397_s6, 128  ;;  %p493_p1 = scmp.lt.s32.totalorder %s397_s6, %s397_s6 }
   0xe   :  { %444 = vmatpush3.msra.mxu0 %v31_v8  ;;  %212 = vrot.lane.b32.xlu1 %v404_v14, %s513_s8  ;;  %p489_p0 = scmp.ne.s32.totalorder %s397_s6, %s488_s21  ;;  %p494_p2 = scmp.lt.s32.totalorder %s488_s21, %s488_s21 }
   0xf   :  { %445 = vmatprep.subr.mxu0 %v510_v1 }
  0x10   :  { %446 = vmatpush3.msra.mxu0 %v30_v9  ;;  %p495_p3 = por %p494_p2, %p493_p1 }
  0x11   :  { %448 = vmatmul.mubr.msk.f32.vlgmr.msra.gmra.mxu0 %vm44_vm1, %v29_v10 }
  0x12   :  { %303 = vrot.lane.b32.xlu1 %v298_v41, %s515_s20  ;;  %p496_p4 = pnand %p495_p3, %p489_p0 }
  0x7f   :  { %v124_v19 = vpop.permute.xlu0 %123 }
  0x80   :  { %v213_v43 = vpop.permute.xlu1 %212 }
  0x84   :  { %v304_v48 = vpop.permute.xlu1 %303 }
  0xd1   :  { %v114_v15 = vpop.f32.mrf.mxu0 }
  0xd2   :  { %v115_v16 = vadd.f32 %v404_v14, %v114_v15 }
  0xd3   :  { %v449_v17 = vpop.f32.mrf.mxu0 }
  0xd4   :  { %v118_v18 = vmax.f32 %v115_v16, 0.0 }
  0xd6   :  { %459 = vmatmul.mubr.msk.f32.vlgmr.msra.gmra.mxu1 %vm126_vm2, %v118_v18 }
  0xd7   :  { %465 = vmatprep.mubr.msk.f32.mxu1 %vm511_vm0, %v510_v1  ;;  %462 = vmatpush3.msra.mxu1 %v211_v25 }
  0xd8   :  { %463 = vmatprep.subr.mxu1 %v510_v1 }
  0xd9   :  { %464 = vmatpush3.msra.mxu1 %v210_v26 }
  0xda   :  { %468 = vmatprep.subr.mxu1 %v510_v1 }
 0x196   :  { %v196_v20 = vpop.f32.mrf.mxu1 }
 0x197   :  { %v197_v21 = vadd.f32 %v196_v20, %v124_v19 }
 0x198   :  { %v460_v22 = vpop.f32.mrf.mxu1 }
 0x199   :  { %v201_v23 = vmul.f32 0.5, %v197_v21 }
 0x19b   :  { %v202_v24 = vmul.f32 1.442695, %v201_v23 }
 0x19d   :  { %486 = vpow2.f32 %v202_v24 }
 0x1aa   :  { %v487_v27 = vpop.eup %486 }
 0x1ab   :  { %205 = vrot.lane.b32.xlu0 %v487_v27, %s514_s9 }
 0x1af   :  { %305 = vrot.lane.b32.xlu0 %v302_v42, %s515_s20 }
 0x21d   :  { %v206_v29 = vpop.permute.xlu0 %205 }
 0x21e   :  { %v208_v30 = vmul.f32 %v206_v29, %v200_v28 }
 0x220   :  { %v209_v31 = vadd.f32 %v208_v30, %v197_v21 }
 0x221   :  { %v306_v49 = vpop.permute.xlu0 %305 }
 0x222   :  { %466 = vmatmul.mubr.msk.f32.vlgmr.msra.gmra.mxu1 %vm215_vm3, %v209_v31  ;;  %v307_v50 = vsel %vm126_vm2, %v304_v48, %v306_v49 }
 0x223   :  { %469 = vmatpush3.msra.mxu1 %v293_v32  ;;  %476 = vmatprep.mubr.msk.f32.mxu1 %vm511_vm0, %v510_v1 }
 0x224   :  { %470 = vmatprep.subr.mxu1 %v510_v1 }
 0x225   :  { %471 = vmatpush3.msra.mxu1 %v292_v33 }
 0x226   :  { %472 = vmatprep.subr.mxu1 %v510_v1 }
 0x227   :  { %473 = vmatpush3.msra.mxu1 %v291_v34 }
 0x228   :  { %474 = vmatprep.subr.mxu1 %v510_v1 }
 0x229   :  { %475 = vmatpush3.msra.mxu1 %v290_v35 }
 0x2e2   :  { %v285_v44 = vpop.f32.mrf.mxu1 }
 0x2e3   :  { %v286_v45 = vadd.f32 %v285_v44, %v213_v43 }
 0x2e4   :  { %v467_v46 = vpop.f32.mrf.mxu1 }
 0x2e5   :  { %v289_v47 = vmax.f32 %v286_v45, 0.0 }
 0x2e7   :  { %477 = vmatmul.mubr.msk.f32.vlgmr.msra.gmra.mxu1 %vm126_vm2, %v289_v47 }
 0x3a7   :  { %v378_v51 = vpop.f32.mrf.mxu1 }
 0x3a8   :  { %v379_v52 = vadd.f32 %v378_v51, %v307_v50 }
 0x3a9   :  { %v478_v53 = vpop.f32.mrf.mxu1 }
 0x3aa   :  { %383 = vrot.lane.b32.xlu1 %v379_v52, %s515_s20 }
 0x41c   :  { %v384_v54 = vpop.permute.xlu1 %383 }
 0x41d   :  { %v386_v55 = vsel %vm126_vm2, %v197_v21, %v384_v54 }
 0x41e   :  { %v388_v56 = vsel %vm387_vm4, %v386_v55, 0.0 }
 0x41f   :  { %389 = vst [vmem:[#allocation2] sm:$0xff] %v388_v56 }
 0x420   :  { %499 = shalt.err (!%p496_p4)
}
 0x421   :  { %399 = dma.vmem_to_hbm [thread:$0]  %s397_s6, 128, %s663_s7, [#allocation3]  }
 0x422   :  { %508 = dma.done.wait [#allocation3], 128  }
 0x423   :  { %509 = vsyncadd [#allocation3], 4294967168 }
 0x424   :  { %403 = vsyncpa [#allocation3], 1 }

</bundles_post_ra>
